<compile_context>
chip_gen: v7x
topology: tpu7x:2x2x1
jax: 0.10.0
libtpu: 0.0.40
codegen_flags: <defaults>
</compile_context>

<pallas_src>
import functools

import jax
import jax.numpy as jnp
import numpy as np
from jax.experimental import pallas as pl
from jax.experimental.pallas import tpu as pltpu


def _cdiv(a, b):
    return -(-a // b)


def _round_up(a, m):
    return _cdiv(a, m) * m


def _choose_tile_rows(total_rows, row_elems, target_bytes=2 * 1024 * 1024):
    """Rows per grid step: ~target_bytes of f32 per x tile, a multiple of 32
    (covers f32/bf16/int8 sublane packing), and at least 2 grid steps when the
    batch allows it (v7x 2-TC sharding of the 'parallel' batch axis)."""
    q = 32
    rows = max(q, (target_bytes // (row_elems * 4)) // q * q)
    if total_rows > q:
        rows = min(rows, _round_up(_cdiv(total_rows, 2), q))
    rows = min(rows, _round_up(total_rows, q))
    return int(rows)


def _radial_kernel_rows(a_ref, b_ref, c_ref, x_ref, xo_ref, ld_ref, *, d):
    """Row-major path (features on lanes).  Used for D >= 128 or when the
    lane-packed reshape does not apply.

    x_ref : (TILE_B, D) caller dtype     c_ref : (1, D) f32
    xo_ref: (TILE_B, D) caller dtype     ld_ref: (TILE_B, 1) f32
    a_ref, b_ref: (1,) f32 SMEM scalars (already a=exp(a_raw), b=-a+softplus(b_raw)).
    """
    a = a_ref[0]
    b = b_ref[0]

    x = x_ref[...].astype(jnp.float32)                           # (TB, D)
    diff = x - c_ref[...]
    r = jnp.sqrt(jnp.sum(diff * diff, axis=1, keepdims=True))    # (TB, 1)

    h = pl.reciprocal(a + r, approx=True)                        # h(r) = 1/(a+r)
    tmp = b * h

    xo_ref[...] = (x + tmp * diff).astype(xo_ref.dtype)

    # (d-1)*log(1+tmp) + log(1 + tmp + b*h'(r)*r); the second argument is
    # simplified analytically to 1 + a*b*h^2 (same value, fewer vector ops).
    # TODO(synk): on v5e the (TILE_B, 1) log_det store is ~TILE_B/8 masked
    # vst.msk; a lane-dense store would need an in-kernel sublane->lane
    # relayout, left out since this path is only used when D >= 128 (x_out
    # stores dominate) or for irregular D.
    ld_ref[...] = (d - 1) * jnp.log(1.0 + tmp) + jnp.log(1.0 + (a * b) * (h * h))


def _radial_kernel_packed(a_ref, b_ref, c_ref, gsum_ref, gexp_ref,
                          x_ref, xo_ref, ld_ref, *, d):
    """Lane-packed path for D < 128 with 128 % D == 0: g = 128/D samples share
    each 128-lane row (a pure row-major reshape of the input — no transpose,
    no extra HBM pass).

    x_ref  : (TILE_R, 128) caller dtype   c_ref  : (1, 128) f32 (c tiled g times)
    gsum_ref: (128, g) f32 0/1            gexp_ref: (g, 128) f32 0/1
    xo_ref : (TILE_R, 128) caller dtype   ld_ref : (TILE_R, g) f32
    """
    a = a_ref[0]
    b = b_ref[0]

    x = x_ref[...].astype(jnp.float32)                           # (TR, 128)
    diff = x - c_ref[...]

    # Per-sample sum of squares over each D-lane group: tiny constant 0/1
    # matmul on the otherwise-idle MXU (avoids low-lane-utilization reductions).
    sq = jnp.dot(diff * diff, gsum_ref[...],
                 preferred_element_type=jnp.float32)             # (TR, g)
    r = jnp.sqrt(sq)
    h = pl.reciprocal(a + r, approx=True)
    tmp = b * h                                                  # (TR, g)

    # Broadcast tmp back to the 128-lane layout (each value repeated D lanes).
    tmp_full = jnp.dot(tmp, gexp_ref[...],
                       preferred_element_type=jnp.float32)       # (TR, 128)

    xo_ref[...] = (x + tmp_full * diff).astype(xo_ref.dtype)
    ld_ref[...] = (d - 1) * jnp.log(1.0 + tmp) + jnp.log(1.0 + (a * b) * (h * h))


def radial_flow(x, a_raw, b_raw, c, *, tile_rows=None):
    """RadialFlow forward.  x: (B, D), a_raw/b_raw: (1,), c: (1, D).

    Returns (x_out (B, D) in x.dtype, log_det (B, 1) f32), matching the
    PyTorch module's forward.
    """
    B, D = x.shape
    out_dtype = x.dtype

    # Hoist the scalar parameter transforms out of the kernel (SMEM scalars).
    a = jnp.exp(jnp.asarray(a_raw, jnp.float32).reshape((1,)))
    b = -a + jax.nn.softplus(jnp.asarray(b_raw, jnp.float32).reshape((1,)))
    c32 = jnp.asarray(c, jnp.float32).reshape((1, D))

    compiler_params = pltpu.CompilerParams(
        dimension_semantics=("parallel",),
        vmem_limit_bytes=32 * 1024 * 1024,   # raise v5e's 16 MiB scoped default
    )
    smem_spec = pl.BlockSpec(memory_space=pltpu.SMEM)

    packed = (D < 128) and (128 % D == 0) and ((B * D) % 128 == 0)

    if packed:
        g = 128 // D
        rows = (B * D) // 128
        tr = tile_rows if tile_rows is not None else _choose_tile_rows(rows, 128)
        grid = (_cdiv(rows, tr),)

        x2 = x.reshape(rows, 128)                      # free row-major reshape
        c_t = jnp.tile(c32, (1, g))                    # (1, 128)
        gsum_np = (np.arange(128)[:, None] // D == np.arange(g)[None, :])
        gsum = jnp.asarray(gsum_np, jnp.float32)       # (128, g) group-sum
        gexp = jnp.asarray(gsum_np.T, jnp.float32)     # (g, 128) group-expand

        xo2, ld2 = pl.pallas_call(
            functools.partial(_radial_kernel_packed, d=D),
            out_shape=(
                jax.ShapeDtypeStruct((rows, 128), out_dtype),
                jax.ShapeDtypeStruct((rows, g), jnp.float32),
            ),
            grid=grid,
            in_specs=[
                smem_spec,                                    # a
                smem_spec,                                    # b
                pl.BlockSpec((1, 128), lambda i: (0, 0)),     # c tiled (resident)
                pl.BlockSpec((128, g), lambda i: (0, 0)),     # group-sum matrix
                pl.BlockSpec((g, 128), lambda i: (0, 0)),     # group-expand matrix
                pl.BlockSpec((tr, 128), lambda i: (i, 0)),    # x tile
            ],
            out_specs=(
                pl.BlockSpec((tr, 128), lambda i: (i, 0)),    # x_out tile
                pl.BlockSpec((tr, g), lambda i: (i, 0)),      # log_det tile
            ),
            compiler_params=compiler_params,
        )(a, b, c_t, gsum, gexp, x2)

        x_out = xo2.reshape(B, D)                      # free reshapes
        log_det = ld2.reshape(B, 1)
    else:
        tr = tile_rows if tile_rows is not None else _choose_tile_rows(B, D)
        grid = (_cdiv(B, tr),)

        x_out, log_det = pl.pallas_call(
            functools.partial(_radial_kernel_rows, d=D),
            out_shape=(
                jax.ShapeDtypeStruct((B, D), out_dtype),
                jax.ShapeDtypeStruct((B, 1), jnp.float32),
            ),
            grid=grid,
            in_specs=[
                smem_spec,                                    # a
                smem_spec,                                    # b
                pl.BlockSpec((1, D), lambda i: (0, 0)),       # c (resident)
                pl.BlockSpec((tr, D), lambda i: (i, 0)),      # x tile
            ],
            out_specs=(
                pl.BlockSpec((tr, D), lambda i: (i, 0)),      # x_out tile
                pl.BlockSpec((tr, 1), lambda i: (i, 0)),      # log_det tile
            ),
            compiler_params=compiler_params,
        )(a, b, c32, x)

    return x_out, log_det


def radial_flow_ref(x, a_raw, b_raw, c):
    """Pure-JAX reference mirroring the PyTorch forward exactly."""
    a = jnp.exp(a_raw)
    b = -a + jax.nn.softplus(b_raw)
    diff = x - c
    r = jnp.sqrt(jnp.sum(diff * diff, axis=1, keepdims=True))
    h = 1.0 / (a + r)
    tmp = b * h
    x_out = x + tmp * diff
    d = x.shape[1]
    log_det = (d - 1) * jnp.log(1.0 + tmp) + jnp.log(1.0 + tmp + b * (-(h * h)) * r)
    return x_out, log_det


if __name__ == "__main__":
    key = jax.random.PRNGKey(0)
    k_a, k_b, k_c1, k_x1, k_c2, k_x2, k_c3, k_x3 = jax.random.split(key, 8)

    a_raw = jax.random.normal(k_a, (1,), dtype=jnp.float32)       # self.a
    b_raw = jax.random.normal(k_b, (1,), dtype=jnp.float32)       # self.b

    # Case 1: D=32 (divides 128) -> lane-packed reshape path, f32,
    # 2-step grid with a partial last block.
    B1, D1 = 300, 32
    c1 = jax.random.normal(k_c1, (1, D1), dtype=jnp.float32)      # self.c
    x1 = jax.random.normal(k_x1, (B1, D1), dtype=jnp.float32)
    xo1, ld1 = radial_flow(x1, a_raw, b_raw, c1)
    jax.block_until_ready((xo1, ld1))
    xr1, lr1 = radial_flow_ref(x1, a_raw, b_raw, c1)
    assert xo1.shape == (B1, D1) and ld1.shape == (B1, 1)
    assert jnp.allclose(xo1, xr1, atol=1e-2, rtol=1e-2)
    assert jnp.allclose(ld1, lr1, atol=1e-2, rtol=1e-2)

    # Case 2: D=128 -> row-major path, bf16 HBM I/O (half the bytes),
    # 2-step grid with a partial last block.
    B2, D2 = 100, 128
    c2 = jax.random.normal(k_c2, (1, D2), dtype=jnp.float32)
    x2 = jax.random.normal(k_x2, (B2, D2), dtype=jnp.float32).astype(jnp.bfloat16)
    xo2, ld2 = radial_flow(x2, a_raw, b_raw, c2)
    jax.block_until_ready((xo2, ld2))
    xr2, lr2 = radial_flow_ref(x2.astype(jnp.float32), a_raw, b_raw, c2)
    assert xo2.shape == (B2, D2) and xo2.dtype == jnp.bfloat16
    assert ld2.shape == (B2, 1) and ld2.dtype == jnp.float32
    assert jnp.allclose(xo2.astype(jnp.float32), xr2, atol=5e-2, rtol=5e-2)
    assert jnp.allclose(ld2, lr2, atol=5e-2, rtol=5e-2)

    # Case 3: D=20 (does not divide 128) -> generic fallback with masked
    # lanes and a partial last batch block, f32.
    B3, D3 = 37, 20
    c3 = jax.random.normal(k_c3, (1, D3), dtype=jnp.float32)
    x3 = jax.random.normal(k_x3, (B3, D3), dtype=jnp.float32)
    xo3, ld3 = radial_flow(x3, a_raw, b_raw, c3)
    jax.block_until_ready((xo3, ld3))
    xr3, lr3 = radial_flow_ref(x3, a_raw, b_raw, c3)
    assert xo3.shape == (B3, D3) and ld3.shape == (B3, 1)
    assert jnp.allclose(xo3, xr3, atol=1e-2, rtol=1e-2)
    assert jnp.allclose(ld3, lr3, atol=1e-2, rtol=1e-2)

    print("KERNEL_OK")
</pallas_src>

<mosaic_0001>
module attributes {stable_mosaic.version = 11 : i64} {
  func.func @_radial_kernel_packed(%arg0: i32, %arg1: memref<1xf32, #tpu.memory_space<smem>>, %arg2: memref<1xf32, #tpu.memory_space<smem>>, %arg3: memref<1x128xf32, #tpu.memory_space<vmem>>, %arg4: memref<128x4xf32, #tpu.memory_space<vmem>>, %arg5: memref<4x128xf32, #tpu.memory_space<vmem>>, %arg6: memref<64x128xf32, #tpu.memory_space<vmem>>, %arg7: memref<64x128xf32, #tpu.memory_space<vmem>>, %arg8: memref<64x4xf32, #tpu.memory_space<vmem>>) attributes {dimension_semantics = [#tpu.dimension_semantics<parallel>], iteration_bounds = array<i64: 2>, scalar_prefetch = 0 : i64, scratch_operands = 0 : i64, tpu.core_type = #tpu.core_type<tc>, window_params = [{transform_indices = @transform_0, window_bounds = array<i64: 1>}, {transform_indices = @transform_1, window_bounds = array<i64: 1>}, {pipeline_mode = #tpu.pipeline_mode<synchronous>, transform_indices = @transform_2, window_bounds = array<i64: 1, 128>}, {pipeline_mode = #tpu.pipeline_mode<synchronous>, transform_indices = @transform_3, window_bounds = array<i64: 128, 4>}, {pipeline_mode = #tpu.pipeline_mode<synchronous>, transform_indices = @transform_4, window_bounds = array<i64: 4, 128>}, {transform_indices = @transform_5, window_bounds = array<i64: 64, 128>}, {transform_indices = @transform_6, window_bounds = array<i64: 64, 128>}, {transform_indices = @transform_7, window_bounds = array<i64: 64, 4>}]} {
    %c0 = arith.constant 0 : index
    %0 = memref.load %arg1[%c0] : memref<1xf32, #tpu.memory_space<smem>>
    %c0_0 = arith.constant 0 : index
    %1 = memref.load %arg2[%c0_0] : memref<1xf32, #tpu.memory_space<smem>>
    %c0_1 = arith.constant 0 : index
    %c0_2 = arith.constant 0 : index
    %2 = vector.load %arg6[%c0_1, %c0_2] : memref<64x128xf32, #tpu.memory_space<vmem>>, vector<64x128xf32>
    %c0_3 = arith.constant 0 : index
    %c0_4 = arith.constant 0 : index
    %3 = vector.load %arg3[%c0_3, %c0_4] : memref<1x128xf32, #tpu.memory_space<vmem>>, vector<1x128xf32>
    %4 = vector.broadcast %3 : vector<1x128xf32> to vector<64x128xf32>
    %5 = arith.subf %2, %4 : vector<64x128xf32>
    %6 = arith.mulf %5, %5 : vector<64x128xf32>
    %c0_5 = arith.constant 0 : index
    %c0_6 = arith.constant 0 : index
    %7 = vector.load %arg4[%c0_5, %c0_6] : memref<128x4xf32, #tpu.memory_space<vmem>>, vector<128x4xf32>
    %cst = arith.constant dense<0.000000e+00> : vector<64x4xf32>
    %8 = tpu.matmul %6, %7, %cst {dimension_numbers = #tpu.dot_dimension_numbers<[1], [0], [0], [1], [0, 0, 1, 1], [], []>} : vector<64x128xf32>, vector<128x4xf32>, vector<64x4xf32> -> vector<64x4xf32>
    %9 = math.sqrt %8 : vector<64x4xf32>
    %10 = vector.broadcast %0 : f32 to vector<64x4xf32>
    %11 = arith.addf %10, %9 : vector<64x4xf32>
    %12 = tpu.reciprocal %11 {approx = true} : vector<64x4xf32> -> vector<64x4xf32>
    %13 = vector.broadcast %1 : f32 to vector<64x4xf32>
    %14 = arith.mulf %13, %12 : vector<64x4xf32>
    %c0_7 = arith.constant 0 : index
    %c0_8 = arith.constant 0 : index
    %15 = vector.load %arg5[%c0_7, %c0_8] : memref<4x128xf32, #tpu.memory_space<vmem>>, vector<4x128xf32>
    %cst_9 = arith.constant dense<0.000000e+00> : vector<64x128xf32>
    %16 = tpu.matmul %14, %15, %cst_9 {dimension_numbers = #tpu.dot_dimension_numbers<[1], [0], [0], [1], [0, 0, 1, 1], [], []>} : vector<64x4xf32>, vector<4x128xf32>, vector<64x128xf32> -> vector<64x128xf32>
    %17 = arith.mulf %16, %5 : vector<64x128xf32>
    %18 = arith.addf %2, %17 : vector<64x128xf32>
    %c0_10 = arith.constant 0 : index
    %c0_11 = arith.constant 0 : index
    %19 = vector.load %arg7[%c0_10, %c0_11] : memref<64x128xf32, #tpu.memory_space<vmem>>, vector<64x128xf32>
    tpu.vector_store %arg7[%c0_10, %c0_11], %18 {strides = array<i32>} : memref<64x128xf32, #tpu.memory_space<vmem>>, vector<64x128xf32>,
    %cst_12 = arith.constant 1.000000e+00 : f32
    %20 = vector.broadcast %cst_12 : f32 to vector<64x4xf32>
    %21 = arith.addf %20, %14 : vector<64x4xf32>
    %22 = math.log %21 : vector<64x4xf32>
    %cst_13 = arith.constant 3.100000e+01 : f32
    %23 = vector.broadcast %cst_13 : f32 to vector<64x4xf32>
    %24 = arith.mulf %23, %22 : vector<64x4xf32>
    %25 = arith.mulf %0, %1 : f32
    %26 = arith.mulf %12, %12 : vector<64x4xf32>
    %27 = vector.broadcast %25 : f32 to vector<64x4xf32>
    %28 = arith.mulf %27, %26 : vector<64x4xf32>
    %cst_14 = arith.constant 1.000000e+00 : f32
    %29 = vector.broadcast %cst_14 : f32 to vector<64x4xf32>
    %30 = arith.addf %29, %28 : vector<64x4xf32>
    %31 = math.log %30 : vector<64x4xf32>
    %32 = arith.addf %24, %31 : vector<64x4xf32>
    %c0_15 = arith.constant 0 : index
    %c0_16 = arith.constant 0 : index
    %33 = vector.load %arg8[%c0_15, %c0_16] : memref<64x4xf32, #tpu.memory_space<vmem>>, vector<64x4xf32>
    tpu.vector_store %arg8[%c0_15, %c0_16], %32 {strides = array<i32>} : memref<64x4xf32, #tpu.memory_space<vmem>>, vector<64x4xf32>,
    return
  }
  func.func @transform_0(%arg0: i32) -> i32 {
    %c0_i32 = arith.constant 0 : i32
    %c0_i32_0 = arith.constant 0 : i32
    return %c0_i32 : i32
  }
  func.func @transform_1(%arg0: i32) -> i32 {
    %c0_i32 = arith.constant 0 : i32
    %c0_i32_0 = arith.constant 0 : i32
    return %c0_i32 : i32
  }
  func.func @transform_2(%arg0: i32) -> (i32, i32) {
    %c0_i32 = arith.constant 0 : i32
    %c0_i32_0 = arith.constant 0 : i32
    %c0_i32_1 = arith.constant 0 : i32
    return %c0_i32, %c0_i32_0 : i32, i32
  }
  func.func @transform_3(%arg0: i32) -> (i32, i32) {
    %c0_i32 = arith.constant 0 : i32
    %c0_i32_0 = arith.constant 0 : i32
    %c0_i32_1 = arith.constant 0 : i32
    return %c0_i32, %c0_i32_0 : i32, i32
  }
  func.func @transform_4(%arg0: i32) -> (i32, i32) {
    %c0_i32 = arith.constant 0 : i32
    %c0_i32_0 = arith.constant 0 : i32
    %c0_i32_1 = arith.constant 0 : i32
    return %c0_i32, %c0_i32_0 : i32, i32
  }
  func.func @transform_5(%arg0: i32) -> (i32, i32) {
    %c0_i32 = arith.constant 0 : i32
    %c0_i32_0 = arith.constant 0 : i32
    return %arg0, %c0_i32 : i32, i32
  }
  func.func @transform_6(%arg0: i32) -> (i32, i32) {
    %c0_i32 = arith.constant 0 : i32
    %c0_i32_0 = arith.constant 0 : i32
    return %arg0, %c0_i32 : i32, i32
  }
  func.func @transform_7(%arg0: i32) -> (i32, i32) {
    %c0_i32 = arith.constant 0 : i32
    %c0_i32_0 = arith.constant 0 : i32
    return %arg0, %c0_i32 : i32, i32
  }
}

</mosaic_0001>

<bundles_post_ra>
// kernel: tpu_custom_call.1
= control target key start
LH: loop header
LB: loop body
LE: loop exit
PB: predicated region body
PF: predicated region fallthrough
CT: control target
= control target key end

     0   :  { %s2022_s0 = inlined_call_operand.<no memory space> [shape: f32[1], index: 0, kind: input, shape index: {}]   ;;  %s2023_s1 = inlined_call_operand.<no memory space> [shape: f32[1], index: 1, kind: input, shape index: {}]   ;;  %s2024_s2 = inlined_call_operand.vmem [shape: f32[1,128], index: 2, kind: input, shape index: {}]   ;;  %s2025_s3 = inlined_call_operand.vmem [shape: f32[128,4], index: 3, kind: input, shape index: {}]   ;;  %s2026_s4 = inlined_call_operand.vmem [shape: f32[4,128], index: 4, kind: input, shape index: {}]   ;;  %s2027_s5 = inlined_call_operand.vmem [shape: f32[75,128], index: 5, kind: input, shape index: {}]   ;;  %s2028_s6 = inlined_call_operand.hbm [shape: f32[75,128], index: 6, kind: output, shape index: {0}]   ;;  %s2029_s7 = inlined_call_operand.vmem [shape: f32[75,4], index: 7, kind: output, shape index: {1}]  }
   0x1   :  { %13 = sst [smem:[#allocation2]] %s2022_s0 }
   0x2   :  { %14 = sst [smem:[#allocation3]] %s2023_s1 }
   0x3   :  { %15 = vsyncpa [#allocation5], 0 }
   0x4   :  { %17 = vsyncpa [#allocation5 + $0x1], 0  ;;  %s1619_s28 = smov 0   ;;  %s1621_s29 = smov 0  }
   0x5   :  { %s1623_s30 = smov 0   ;;  %s1625_s8 = smov 0  }
   0x6 LB: > { %s1640_s0 = sadd.s32 4294967295, %s1536_s8   ;;  %s1105_s1 = sadd.s32 4294967294, %s1536_s8   ;;  %s1536_s8 = sphi %s1625_s8, %s2038_s8   ;;  %s1532_s30 = sphi %s1623_s30, %s2037_s30   ;;  %s1528_s29 = sphi %s1621_s29, %s2036_s29   ;;  %s1524_s28 = sphi %s1619_s28, %s2035_s28  }
   0x7   : > { %s1644_s9 = sadd.s32 1, %s1536_s8   ;;  %s161_s10 = sadd.s32 1, %s1532_s30 }
   0x8   : > { %s158_s11 = ssub.s32 %s1536_s8, %s1644_s9  ;;  %p171_p0 = scmp.ne.s32.totalorder %s1532_s30, %s1528_s29 }
   0x9   : > { %p159_p1 = scmp.eq.s32.totalorder %s158_s11, 0  ;;  %p172_p2 = scmp.eq.s32.totalorder %s1640_s0, 1 }
   0xa   : > { %p177_p3 = scmp.ne.s32.totalorder %s1528_s29, %s1524_s28  ;;  %p178_p4 = scmp.eq.s32.totalorder %s1105_s1, 1 }
   0xb   : > { %s1655_s12 = scalar_select %p159_p1, %s1532_s30, %s161_s10  }
   0xc   : > { %p1657_p5 = por %p172_p2, %p171_p0  ;;  %p1661_p6 = por %p178_p4, %p177_p3 }
   0xd   : > { %p1108_p7 = scmp.ge.s32.totalorder %s1536_s8, 1  ;;  %p254_p8 = scmp.lt.s32.totalorder %s1536_s8, 3 }
   0xf   : > { %p255_p9 = pnand %p1108_p7, %p254_p8 }
  0x10   : > { %v351_v0 = vld [vmem:[%s2025_s3] sm:$0xff] (!%p255_p9)  ;;  %v352_v1 = vld [vmem:[%s2025_s3 + $0x8] sm:$0xff] (!%p255_p9)  ;;  %v353_v2 = vld [vmem:[%s2025_s3 + $0x10] sm:$0xff] (!%p255_p9)  ;;  %s1677_s21 = sshll.u32 (!%p255_p9), %s1640_s0, 3  ;;  %vm580_vm0 = vcmask (!%p255_p9), 1043456   ;;  %s285_s27 = sand.u32 (!%p255_p9), 1, %s1528_s29  }
  0x11   : > { %258 = sbr.rel (%p255_p9) target bundleno = 609 (0x261), region = 44  ;;  %v1242_v3 = vpack.c.bf16 (!%p255_p9), %v352_v1, %v351_v0  ;;  %v354_v4 = vld [vmem:[%s2025_s3 + $0x18] sm:$0xff] (!%p255_p9)  ;;  %p299_p10 = scmp.lt.s32.totalorder (!%p255_p9), %s1677_s21, 9  ;;  %v355_v6 = vld [vmem:[%s2025_s3 + $0x20] sm:$0xff] (!%p255_p9)  ;;  %v356_v7 = vld [vmem:[%s2025_s3 + $0x28] sm:$0xff] (!%p255_p9) }
  0x12   : > { %v1246_v5 = vpack.c.bf16 (!%p255_p9), %v354_v4, %v353_v2  ;;  %v1250_v8 = vpack.c.bf16 (!%p255_p9), %v356_v7, %v355_v6  ;;  %v1113_v9 = vld [vmem:[%s2024_s2] ss:$0 sm:$0xff] (!%p255_p9)  ;;  %v357_v10 = vld [vmem:[%s2025_s3 + $0x30] sm:$0xff] (!%p255_p9)  ;;  %v358_v11 = vld [vmem:[%s2025_s3 + $0x38] sm:$0xff] (!%p255_p9)  ;;  %s1857_s15 = sshll.u32 (!%p255_p9), %s285_s27, 6  ;;  %s1910_s18 = scalar_lea.sflag (!%p255_p9), [#allocation5], %s285_s27 }
  0x13   : > { %1243 = vmatprep.subr.bf16.mxu0 (!%p255_p9), %v1242_v3  ;;  %v1254_v14 = vpack.c.bf16 (!%p255_p9), %v358_v11, %v357_v10  ;;  %v359_v15 = vld [vmem:[%s2025_s3 + $0x40] sm:$0xff] (!%p255_p9)  ;;  %v360_v16 = vld [vmem:[%s2025_s3 + $0x48] sm:$0xff] (!%p255_p9)  ;;  %v361_v19 = vld [vmem:[%s2025_s3 + $0x50] sm:$0xff] (!%p255_p9)  ;;  %s1863_s16 = scalar_lea.vmem (!%p255_p9), [#allocation6], %s1857_s15   ;;  %s1886_s17 = scalar_lea.vmem (!%p255_p9), [#allocation4], %s1857_s15 }
  0x14   : > { %1245 = vmatpush3.bf16.msra.mxu0 (!%p255_p9), %v1242_v3  ;;  %v1258_v18 = vpack.c.bf16 (!%p255_p9), %v360_v16, %v359_v15  ;;  %v362_v20 = vld [vmem:[%s2025_s3 + $0x58] sm:$0xff] (!%p255_p9)  ;;  %v363_v22 = vld [vmem:[%s2025_s3 + $0x60] sm:$0xff] (!%p255_p9)  ;;  %v364_v23 = vld [vmem:[%s2025_s3 + $0x68] sm:$0xff] (!%p255_p9) }
  0x15   : > { %1247 = vmatprep.subr.bf16.mxu0 (!%p255_p9), %v1246_v5  ;;  %v1262_v21 = vpack.c.bf16 (!%p255_p9), %v362_v20, %v361_v19  ;;  %v1266_v24 = vpack.c.bf16 (!%p255_p9), %v364_v23, %v363_v22  ;;  %v365_v25 = vld [vmem:[%s2025_s3 + $0x70] sm:$0xff] (!%p255_p9)  ;;  %v366_v26 = vld [vmem:[%s2025_s3 + $0x78] sm:$0xff] (!%p255_p9)  ;;  %v554_v49 = vld [vmem:[%s2026_s4] sm:$0xf] (!%p255_p9) }
  0x16   : > { %v1270_v28 = vpack.c.bf16 (!%p255_p9), %v366_v26, %v365_v25  ;;  %1228 = vmatprep.subr.msk.mxu1 (!%p255_p9), %vm580_vm0, %v554_v49 }
  0x17   : > { %1229 = vmatpush3.msk.msra.mxu1 (!%p255_p9), %vm580_vm0, %v554_v49 }
  0x18   : > { %s300_s1 = scalar_select %p299_p10, %s1677_s21, 9  ;;  %1249 = vmatpush3.bf16.msra.mxu0 %v1246_v5 }
  0x19   : > { %1251 = vmatprep.subr.bf16.mxu0 %v1250_v8  ;;  %s816_s19 = ssub.s32 (%p1657_p5), 10, %s1677_s21 }
  0x1a   : > { %s1112_s10 = sshll.u32 %s300_s1, 3  ;;  %s1796_s1 = sld [smem:[#allocation2]] }
  0x1b   : > { %s1702_s23 = scalar_lea.vmem %s2027_s5, %s1112_s10  ;;  %s1798_s10 = sld [smem:[#allocation3]] }
  0x1c   : > { %v1705_v12 = vld [vmem:[%s1702_s23] sm:$0xff]  ;;  %1253 = vmatpush3.bf16.msra.mxu0 %v1250_v8  ;;  %v1737_v27 = vld [vmem:[%s1702_s23 + $0x8] sm:$0xff]  ;;  %v1740_v29 = vld [vmem:[%s1702_s23 + $0x10] sm:$0xff]  ;;  %p817_p11 = scmp.lt.s32.totalorder (%p1657_p5), %s816_s19, 8 }
  0x1d   : > { %v1708_v13 = vsub.f32 %v1705_v12, %v1113_v9  ;;  %1255 = vmatprep.subr.bf16.mxu0 %v1254_v14  ;;  %v1743_v30 = vsub.f32 %v1737_v27, %v1113_v9  ;;  %v1746_v31 = vsub.f32 %v1740_v29, %v1113_v9  ;;  %v1749_v32 = vld [vmem:[%s1702_s23 + $0x18] sm:$0xff]  ;;  %v1752_v33 = vld [vmem:[%s1702_s23 + $0x20] sm:$0xff]  ;;  %v1765_v38 = vld [vmem:[%s1702_s23 + $0x28] sm:$0xff] }
  0x1e   : > { %v1757_v35 = vsub.f32 %v1749_v32, %v1113_v9  ;;  %v1762_v37 = vsub.f32 %v1752_v33, %v1113_v9  ;;  %v1768_v39 = vld [vmem:[%s1702_s23 + $0x30] sm:$0xff]  ;;  %v1773_v41 = vsub.f32 %v1765_v38, %v1113_v9  ;;  %v1781_v44 = vld [vmem:[%s1702_s23 + $0x38] sm:$0xff] }
  0x1f   : > { %v343_v17 = vmul.f32 %v1708_v13, %v1708_v13  ;;  %v344_v34 = vmul.f32 %v1743_v30, %v1743_v30  ;;  %v345_v36 = vmul.f32 %v1746_v31, %v1746_v31  ;;  %v1778_v43 = vsub.f32 %v1768_v39, %v1113_v9 }
  0x20   : > { %1257 = vmatpush3.bf16.msra.mxu0 %v1254_v14  ;;  %v346_v40 = vmul.f32 %v1757_v35, %v1757_v35  ;;  %v347_v42 = vmul.f32 %v1762_v37, %v1762_v37  ;;  %v348_v45 = vmul.f32 %v1773_v41, %v1773_v41  ;;  %v1786_v46 = vsub.f32 %v1781_v44, %v1113_v9 }
  0x21   : > { %1216 = vmatprep.mubr.f32.mxu0 %v343_v17  ;;  %1259 = vmatprep.subr.bf16.mxu0 %v1258_v18  ;;  %v349_v47 = vmul.f32 %v1778_v43, %v1778_v43  ;;  %v1801_v59 = vstv %s1796_s1  ;;  %v1810_v5 = vstv %s1798_s10  ;;  %s745_s11 = smul.f32 %s1798_s10, %s1796_s1 }
  0x22   : > { %v350_v48 = vmul.f32 %v1786_v46, %v1786_v46 }
  0x24   : > { %1261 = vmatpush3.bf16.msra.mxu0 %v1258_v18 }
  0x25   : > { %1263 = vmatprep.subr.bf16.mxu0 %v1262_v21 }
  0x28   : > { %1265 = vmatpush3.bf16.msra.mxu0 %v1262_v21 }
  0x29   : > { %1267 = vmatprep.subr.bf16.mxu0 %v1266_v24 }
  0x2c   : > { %1269 = vmatpush3.bf16.msra.mxu0 %v1266_v24 }
  0x2d   : > { %1271 = vmatprep.subr.bf16.mxu0 %v1270_v28 }
  0x30   : > { %1273 = vmatpush3.bf16.msra.mxu0 %v1270_v28 }
  0x33   : > { %1217 = vmatmul.mubr.f32.vlgmr.msra.gmra.mrb[0].mxu0 %v344_v34 }
  0x34   : > { %1219 = vmatprep.mubr.f32.mxu0 %v345_v36 }
  0x37   : > { %1220 = vmatmul.mubr.f32.gmra.mrb[2].mxu0 %v346_v40 }
  0x38   : > { %1222 = vmatprep.mubr.f32.mxu0 %v347_v42 }
  0x3b   : > { %1223 = vmatmul.mubr.f32.gmra.mrb[4].mxu0 %v348_v45 }
  0x3c   : > { %1225 = vmatprep.mubr.f32.mxu0 %v349_v47 }
  0x3f   : > { %1226 = vmatmul.mubr.f32.gmra.mrb[6].mxu0 %v350_v48 }
 0x106   : > { %v1218_v50 = vpop.f32.mrb[0].mxu0 }
 0x107   : > { %1378 = vrsqrt.f32 %v1218_v50  ;;  %v433_v51 = vpop.f32.mrb[1].mxu0  ;;  %vm481_vm1 = vcmp.eq.f32.partialorder %v1218_v50, inf  ;;  %vm483_vm2 = vcmp.eq.f32.partialorder %v1218_v50, 0.0  ;;  %v484_v61 = vand.u32 2147483648, %v1218_v50 }
 0x108   : > { %1380 = vrsqrt.f32 %v433_v51  ;;  %vm474_vm3 = vcmp.eq.f32.partialorder %v433_v51, inf  ;;  %v477_v1 = vand.u32 2147483648, %v433_v51  ;;  %vm476_vm4 = vcmp.eq.f32.partialorder %v433_v51, 0.0 }
 0x10a   : > { %v1221_v52 = vpop.f32.mrb[2].mxu0 }
 0x10b   : > { %1382 = vrsqrt.f32 %v1221_v52  ;;  %v443_v53 = vpop.f32.mrb[3].mxu0  ;;  %vm495_vm5 = vcmp.eq.f32.partialorder %v1221_v52, inf  ;;  %vm497_vm6 = vcmp.eq.f32.partialorder %v1221_v52, 0.0  ;;  %v498_v10 = vand.u32 2147483648, %v1221_v52 }
 0x10c   : > { %1384 = vrsqrt.f32 %v443_v53  ;;  %vm488_vm7 = vcmp.eq.f32.partialorder %v443_v53, inf  ;;  %v491_v16 = vand.u32 2147483648, %v443_v53  ;;  %vm490_vm8 = vcmp.eq.f32.partialorder %v443_v53, 0.0 }
 0x10e   : > { %v1224_v54 = vpop.f32.mrb[4].mxu0 }
 0x10f   : > { %1386 = vrsqrt.f32 %v1224_v54  ;;  %v453_v55 = vpop.f32.mrb[5].mxu0  ;;  %vm509_vm9 = vcmp.eq.f32.partialorder %v1224_v54, inf  ;;  %vm511_vm10 = vcmp.eq.f32.partialorder %v1224_v54, 0.0  ;;  %v512_v25 = vand.u32 2147483648, %v1224_v54 }
 0x110   : > { %1388 = vrsqrt.f32 %v453_v55  ;;  %vm502_vm11 = vcmp.eq.f32.partialorder %v453_v55, inf  ;;  %v505_v34 = vand.u32 2147483648, %v453_v55  ;;  %vm504_vm12 = vcmp.eq.f32.partialorder %v453_v55, 0.0 }
 0x111   : > { %v1379_v56 = vpop.eup %1378 }
 0x112   : > { %v1381_v57 = vpop.eup %1380  ;;  %v480_v58 = vmul.f32 %v1379_v56, %v1218_v50  ;;  %v1803_v60 = vpop.f32.mrb[6].mxu0 }
 0x113   : > { %v473_v62 = vmul.f32 %v1381_v57, %v433_v51  ;;  %1390 = vrsqrt.f32 %v1803_v60  ;;  %v1806_v63 = vpop.f32.mrb[7].mxu0  ;;  %vm523_vm13 = vcmp.eq.f32.partialorder %v1803_v60, inf  ;;  %vm525_vm14 = vcmp.eq.f32.partialorder %v1803_v60, 0.0 }
 0x114   : > { %v482_v0 = vsel %vm481_vm1, %v1218_v50, %v480_v58  ;;  %1392 = vrsqrt.f32 %v1806_v63  ;;  %vm516_vm15 = vcmp.eq.f32.partialorder %v1806_v63, inf  ;;  %vm518_vm0 = vcmp.eq.f32.partialorder %v1806_v63, 0.0 }
 0x115   : > { %v1383_v2 = vpop.eup %1382  ;;  %v485_v3 = vsel %vm483_vm2, %v484_v61, %v482_v0  ;;  %v475_v4 = vsel %vm474_vm3, %v433_v51, %v473_v62  ;;  %v526_v51 = vand.u32 2147483648, %v1803_v60  ;;  %v1831_v62 = vstv %s745_s11 }
 0x116   : > { %v1385_v6 = vpop.eup %1384  ;;  %v530_v7 = vadd.f32 %v1801_v59, %v485_v3  ;;  %v494_v8 = vmul.f32 %v1383_v2, %v1221_v52  ;;  %v478_v9 = vsel %vm476_vm4, %v477_v1, %v475_v4  ;;  %vm555_vm1 = vcmask 31744  }
 0x117   : > { %v487_v11 = vmul.f32 %v1385_v6, %v443_v53  ;;  %v529_v14 = vadd.f32 %v1801_v59, %v478_v9 }
 0x118   : > { %1394 = vrcp.f32 %v530_v7  ;;  %v496_v15 = vsel %vm495_vm5, %v1221_v52, %v494_v8 }
 0x119   : > { %v1387_v17 = vpop.eup %1386  ;;  %v499_v18 = vsel %vm497_vm6, %v498_v10, %v496_v15  ;;  %v489_v19 = vsel %vm488_vm7, %v443_v53, %v487_v11  ;;  %1396 = vrcp.f32 %v529_v14 }
 0x11a   : > { %v1389_v20 = vpop.eup %1388  ;;  %v532_v21 = vadd.f32 %v1801_v59, %v499_v18  ;;  %v492_v22 = vsel %vm490_vm8, %v491_v16, %v489_v19  ;;  %v508_v23 = vmul.f32 %v1387_v17, %v1224_v54 }
 0x11b   : > { %v531_v24 = vadd.f32 %v1801_v59, %v492_v22  ;;  %v501_v26 = vmul.f32 %v1389_v20, %v453_v55 }
 0x11c   : > { %1398 = vrcp.f32 %v532_v21  ;;  %v510_v28 = vsel %vm509_vm9, %v1224_v54, %v508_v23  ;;  %v519_v54 = vand.u32 2147483648, %v1806_v63 }
 0x11d   : > { %v1391_v36 = vpop.eup %1390  ;;  %1400 = vrcp.f32 %v531_v24  ;;  %v513_v40 = vsel %vm511_vm10, %v512_v25, %v510_v28  ;;  %v503_v42 = vsel %vm502_vm11, %v453_v55, %v501_v26 }
 0x11e   : > { %v1393_v45 = vpop.eup %1392  ;;  %v534_v47 = vadd.f32 %v1801_v59, %v513_v40  ;;  %v506_v48 = vsel %vm504_vm12, %v505_v34, %v503_v42  ;;  %v522_v49 = vmul.f32 %v1391_v36, %v1803_v60 }
 0x11f   : > { %v533_v50 = vadd.f32 %v1801_v59, %v506_v48  ;;  %v515_v52 = vmul.f32 %v1393_v45, %v1806_v63 }
 0x120   : > { %1402 = vrcp.f32 %v534_v47  ;;  %v524_v53 = vsel %vm523_vm13, %v1803_v60, %v522_v49 }
 0x121   : > { %1404 = vrcp.f32 %v533_v50  ;;  %v527_v55 = vsel %vm525_vm14, %v526_v51, %v524_v53  ;;  %v517_v56 = vsel %vm516_vm15, %v1806_v63, %v515_v52 }
 0x122   : > { %v1395_v57 = vpop.eup %1394  ;;  %v536_v58 = vadd.f32 %v1801_v59, %v527_v55  ;;  %v520_v61 = vsel %vm518_vm0, %v519_v54, %v517_v56 }
 0x123   : > { %v1397_v0 = vpop.eup %1396  ;;  %v535_v1 = vadd.f32 %v1801_v59, %v520_v61  ;;  %v547_v60 = vmul.f32 %v1395_v57, %v1810_v5  ;;  %v747_v2 = vmul.f32 %v1395_v57, %v1395_v57 }
 0x124   : > { %1406 = vrcp.f32 %v536_v58  ;;  %v546_v3 = vmul.f32 %v1397_v0, %v1810_v5  ;;  %v746_v4 = vmul.f32 %v1397_v0, %v1397_v0 }
 0x125   : > { %1408 = vrcp.f32 %v535_v1  ;;  %v714_v6 = vadd.f32 1.0, %v547_v60  ;;  %v756_v63 = vmul.f32 %v1831_v62, %v747_v2 }
 0x126   : > { %v1399_v7 = vpop.eup %1398  ;;  %1230 = vmatprep.mubr.msk.f32.mxu1 %vm555_vm1, %v546_v3  ;;  %v713_v8 = vadd.f32 1.0, %v546_v3  ;;  %v755_v9 = vmul.f32 %v1831_v62, %v746_v4 }
 0x127   : > { %v1401_v10 = vpop.eup %1400  ;;  %1231 = vmatmul.mubr.msk.f32.vlgmr.msra.gmra.mrb[0].mxu1 %vm555_vm1, %v547_v60  ;;  %1410 = vlog2.f32 %v714_v6  ;;  %v764_v59 = vadd.f32 1.0, %v756_v63  ;;  %v549_v11 = vmul.f32 %v1399_v7, %v1810_v5  ;;  %v749_v14 = vmul.f32 %v1399_v7, %v1399_v7 }
 0x128   : > { %1412 = vlog2.f32 %v713_v8  ;;  %v763_v15 = vadd.f32 1.0, %v755_v9  ;;  %v548_v16 = vmul.f32 %v1401_v10, %v1810_v5  ;;  %v748_v17 = vmul.f32 %v1401_v10, %v1401_v10 }
 0x129   : > { %1414 = vlog2.f32 %v764_v59  ;;  %v716_v18 = vadd.f32 1.0, %v549_v11  ;;  %v758_v19 = vmul.f32 %v1831_v62, %v749_v14 }
 0x12a   : > { %v1403_v20 = vpop.eup %1402  ;;  %1416 = vlog2.f32 %v763_v15  ;;  %1233 = vmatprep.mubr.msk.f32.mxu1 %vm555_vm1, %v548_v16  ;;  %v715_v21 = vadd.f32 1.0, %v548_v16  ;;  %v757_v22 = vmul.f32 %v1831_v62, %v748_v17 }
 0x12b   : > { %v1405_v23 = vpop.eup %1404  ;;  %1234 = vmatmul.mubr.msk.f32.gmra.mrb[2].mxu1 %vm555_vm1, %v549_v11  ;;  %1418 = vlog2.f32 %v716_v18  ;;  %v766_v24 = vadd.f32 1.0, %v758_v19  ;;  %v551_v25 = vmul.f32 %v1403_v20, %v1810_v5  ;;  %v751_v26 = vmul.f32 %v1403_v20, %v1403_v20 }
 0x12c   : > { %1420 = vlog2.f32 %v715_v21  ;;  %v765_v28 = vadd.f32 1.0, %v757_v22  ;;  %v550_v34 = vmul.f32 %v1405_v23, %v1810_v5  ;;  %v750_v36 = vmul.f32 %v1405_v23, %v1405_v23 }
 0x12d   : > { %1422 = vlog2.f32 %v766_v24  ;;  %v718_v40 = vadd.f32 1.0, %v551_v25  ;;  %v760_v42 = vmul.f32 %v1831_v62, %v751_v26 }
 0x12e   : > { %v1407_v45 = vpop.eup %1406  ;;  %1424 = vlog2.f32 %v765_v28  ;;  %1236 = vmatprep.mubr.msk.f32.mxu1 %vm555_vm1, %v550_v34  ;;  %v717_v47 = vadd.f32 1.0, %v550_v34  ;;  %v759_v48 = vmul.f32 %v1831_v62, %v750_v36 }
 0x12f   : > { %v1409_v49 = vpop.eup %1408  ;;  %1237 = vmatmul.mubr.msk.f32.gmra.mrb[4].mxu1 %vm555_vm1, %v551_v25  ;;  %1426 = vlog2.f32 %v718_v40  ;;  %v768_v50 = vadd.f32 1.0, %v760_v42  ;;  %v553_v51 = vmul.f32 %v1407_v45, %v1810_v5  ;;  %v753_v52 = vmul.f32 %v1407_v45, %v1407_v45 }
 0x130   : > { %1428 = vlog2.f32 %v717_v47  ;;  %v767_v53 = vadd.f32 1.0, %v759_v48  ;;  %v552_v54 = vmul.f32 %v1409_v49, %v1810_v5  ;;  %v752_v55 = vmul.f32 %v1409_v49, %v1409_v49 }
 0x131   : > { %v1411_v56 = vpop.eup %1410  ;;  %1430 = vlog2.f32 %v768_v50  ;;  %v720_v57 = vadd.f32 1.0, %v553_v51  ;;  %v762_v58 = vmul.f32 %v1831_v62, %v753_v52 }
 0x132   : > { %v1413_v61 = vpop.eup %1412  ;;  %v724_v0 = vmul.f32 0.6931472, %v1411_v56  ;;  %1432 = vlog2.f32 %v767_v53  ;;  %1239 = vmatprep.mubr.msk.f32.mxu1 %vm555_vm1, %v552_v54  ;;  %v719_v1 = vadd.f32 1.0, %v552_v54  ;;  %v761_v60 = vmul.f32 %v1831_v62, %v752_v55 }
 0x133   : > { %v1415_v2 = vpop.eup %1414  ;;  %v722_v3 = vmul.f32 0.6931472, %v1413_v61  ;;  %1240 = vmatmul.mubr.msk.f32.gmra.mrb[6].mxu1 %vm555_vm1, %v553_v51  ;;  %1434 = vlog2.f32 %v720_v57  ;;  %v770_v5 = vadd.f32 1.0, %v762_v58 }
 0x134   : > { %v1417_v4 = vpop.eup %1416  ;;  %v738_v6 = vmul.f32 31.0, %v724_v0  ;;  %v774_v63 = vmul.f32 0.6931472, %v1415_v2  ;;  %1436 = vlog2.f32 %v719_v1  ;;  %v769_v7 = vadd.f32 1.0, %v761_v60 }
 0x135   : > { %v1419_v8 = vpop.eup %1418  ;;  %v737_v9 = vmul.f32 31.0, %v722_v3  ;;  %v772_v10 = vmul.f32 0.6931472, %v1417_v4  ;;  %1438 = vlog2.f32 %v770_v5 }
 0x136   : > { %v1421_v59 = vpop.eup %1420  ;;  %v788_v11 = vadd.f32 %v774_v63, %v738_v6  ;;  %v728_v14 = vmul.f32 0.6931472, %v1419_v8  ;;  %1440 = vlog2.f32 %v769_v7 }
 0x137   : > { %v1423_v62 = vpop.eup %1422  ;;  %v787_v15 = vadd.f32 %v772_v10, %v737_v9  ;;  %v726_v16 = vmul.f32 0.6931472, %v1421_v59 }
 0x138   : > { %v1425_v17 = vpop.eup %1424  ;;  %796 = vst.msk [vmem:[%s1863_s16 + $0x8] sm:$0xff] %vm555_vm1, %v788_v11  ;;  %v740_v18 = vmul.f32 31.0, %v728_v14  ;;  %v778_v19 = vmul.f32 0.6931472, %v1423_v62 }
 0x139   : > { %v1427_v20 = vpop.eup %1426  ;;  %795 = vst.msk [vmem:[%s1863_s16] sm:$0xff] %vm555_vm1, %v787_v15  ;;  %v739_v21 = vmul.f32 31.0, %v726_v16  ;;  %v776_v22 = vmul.f32 0.6931472, %v1425_v17 }
 0x13a   : > { %v1429_v23 = vpop.eup %1428  ;;  %v790_v24 = vadd.f32 %v778_v19, %v740_v18  ;;  %v732_v25 = vmul.f32 0.6931472, %v1427_v20 }
 0x13b   : > { %v1431_v26 = vpop.eup %1430  ;;  %v789_v28 = vadd.f32 %v776_v22, %v739_v21  ;;  %v730_v34 = vmul.f32 0.6931472, %v1429_v23 }
 0x13c   : > { %v1433_v36 = vpop.eup %1432  ;;  %798 = vst.msk [vmem:[%s1863_s16 + $0x18] sm:$0xff] %vm555_vm1, %v790_v24  ;;  %v742_v40 = vmul.f32 31.0, %v732_v25  ;;  %v782_v42 = vmul.f32 0.6931472, %v1431_v26 }
 0x13d   : > { %v1435_v45 = vpop.eup %1434  ;;  %797 = vst.msk [vmem:[%s1863_s16 + $0x10] sm:$0xff] %vm555_vm1, %v789_v28  ;;  %v741_v47 = vmul.f32 31.0, %v730_v34  ;;  %v780_v48 = vmul.f32 0.6931472, %v1433_v36 }
 0x13e   : > { %v1437_v49 = vpop.eup %1436  ;;  %v792_v50 = vadd.f32 %v782_v42, %v742_v40  ;;  %v736_v51 = vmul.f32 0.6931472, %v1435_v45 }
 0x13f   : > { %v1439_v52 = vpop.eup %1438  ;;  %v791_v53 = vadd.f32 %v780_v48, %v741_v47  ;;  %v734_v54 = vmul.f32 0.6931472, %v1437_v49 }
 0x140   : > { %v1441_v55 = vpop.eup %1440  ;;  %800 = vst.msk [vmem:[%s1863_s16 + $0x28] sm:$0xff] %vm555_vm1, %v792_v50  ;;  %v744_v56 = vmul.f32 31.0, %v736_v51  ;;  %v786_v57 = vmul.f32 0.6931472, %v1439_v52 }
 0x141   : > { %799 = vst.msk [vmem:[%s1863_s16 + $0x20] sm:$0xff] %vm555_vm1, %v791_v53  ;;  %v743_v58 = vmul.f32 31.0, %v734_v54  ;;  %v784_v61 = vmul.f32 0.6931472, %v1441_v55 }
 0x142   : > { %v794_v0 = vadd.f32 %v786_v57, %v744_v56 }
 0x143   : > { %v793_v1 = vadd.f32 %v784_v61, %v743_v58 }
 0x144   : > { %802 = vst.msk [vmem:[%s1863_s16 + $0x38] sm:$0xff] %vm555_vm1, %v794_v0 }
 0x145   : > { %801 = vst.msk [vmem:[%s1863_s16 + $0x30] sm:$0xff] %vm555_vm1, %v793_v1 }
 0x1fa   : > { %v1232_v60 = vpop.f32.mrb[0].mxu1 }
 0x1fb   : > { %v690_v2 = vmul.f32 %v1232_v60, %v1743_v30  ;;  %v650_v3 = vpop.f32.mrb[1].mxu1 }
 0x1fc   : > { %v689_v5 = vmul.f32 %v650_v3, %v1708_v13 }
 0x1fd   : > { %v698_v4 = vadd.f32 %v690_v2, %v1737_v27 }
 0x1fe   : > { %v697_v6 = vadd.f32 %v689_v5, %v1705_v12  ;;  %v1235_v63 = vpop.f32.mrb[2].mxu1 }
 0x1ff   : > { %706 = vst [vmem:[%s1886_s17 + $0x8] sm:$0xff] %v698_v4  ;;  %v692_v7 = vmul.f32 %v1235_v63, %v1757_v35  ;;  %v660_v8 = vpop.f32.mrb[3].mxu1 }
 0x200   : > { %705 = vst [vmem:[%s1886_s17] sm:$0xff] %v697_v6  ;;  %v691_v13 = vmul.f32 %v660_v8, %v1746_v31 }
 0x201   : > { %v700_v27 = vadd.f32 %v692_v7, %v1749_v32 }
 0x202   : > { %v699_v12 = vadd.f32 %v691_v13, %v1740_v29  ;;  %v1238_v30 = vpop.f32.mrb[4].mxu1 }
 0x203   : > { %708 = vst [vmem:[%s1886_s17 + $0x18] sm:$0xff] %v700_v27  ;;  %v694_v9 = vmul.f32 %v1238_v30, %v1773_v41  ;;  %v670_v10 = vpop.f32.mrb[5].mxu1 }
 0x204   : > { %707 = vst [vmem:[%s1886_s17 + $0x10] sm:$0xff] %v699_v12  ;;  %v693_v35 = vmul.f32 %v670_v10, %v1762_v37 }
 0x205   : > { %v702_v59 = vadd.f32 %v694_v9, %v1765_v38 }
 0x206   : > { %v701_v11 = vadd.f32 %v693_v35, %v1752_v33  ;;  %v1241_v31 = vpop.f32.mrb[6].mxu1  ;;  %814 = sbr.rel (!%p1657_p5) target bundleno = 553 (0x229), region = 48 }
 0x207   : > { %710 = vst [vmem:[%s1886_s17 + $0x28] sm:$0xff] %v702_v59  ;;  %v696_v32 = vmul.f32 %v1241_v31, %v1786_v46  ;;  %v680_v29 = vpop.f32.mrb[7].mxu1 }
 0x208   : > { %709 = vst [vmem:[%s1886_s17 + $0x20] sm:$0xff] %v701_v11  ;;  %v695_v14 = vmul.f32 %v680_v29, %v1778_v43 }
 0x209   : > { %v704_v62 = vadd.f32 %v696_v32, %v1781_v44 }
 0x20a   : > { %v703_v41 = vadd.f32 %v695_v14, %v1768_v39 }
 0x20b   : > { %712 = vst [vmem:[%s1886_s17 + $0x38] sm:$0xff] %v704_v62 }
 0x20c   : > { %711 = vst [vmem:[%s1886_s17 + $0x30] sm:$0xff] %v703_v41 }
 0x20d   : > { %s2040_s19 = smov (!%p817_p11, %s816_s19), 8 }
 0x20e   : > { %s1915_s20 = sshll.u32 %s2040_s19, 7 }
 0x20f   : > { %s821_s22 = ssub.s32 1024, %s1915_s20 }
 0x210   : > { %822 = vsyncadd %s1910_s18, %s821_s22  ;;  %p1127_p12 = scmp.ne.s32.totalorder %s1915_s20, 0  ;;  %s1147_s24 = sshll.u32 %s1640_s0, 10 }
 0x211   : > { %s1924_s23 = scalar_lea.hbm %s2028_s6, %s1147_s24  ;;  %s827_s27 = sshll.u32 %s1886_s17, 4  ;;  %s1927_s27 = int_to_ptr.vmem [resolvable:$true] %s827_s27 }
 0x212   : > { %s1442_s1 = scalar_lea.vmem %s1927_s27, %s1915_s20  ;;  %s1570_s10 = smov [#allocation4]  }
 0x213   : > { %p1443_p13 = scmp.ne.s32.totalorder %s1927_s27, %s1442_s1  ;;  %s1446_s11 = sshll.u32 %s1570_s10, 4  ;;  %s1447_s11 = int_to_ptr.vmem [resolvable:$false] %s1446_s11 }
 0x214   : > { %s1448_s15 = scalar_lea.vmem %s1447_s11, 2048  ;;  %p1449_p2 = scmp.lt.s32.totalorder %s1927_s27, %s1447_s11 }
 0x215   : > { %p1444_p0 = pnand %p1443_p13, %p1127_p12  ;;  %p1450_p3 = scmp.lt.s32.totalorder %s1448_s15, %s1442_s1 }
 0x217   : > { %p1445_p1 = pneg %p1444_p0  ;;  %p1451_p4 = por %p1450_p3, %p1449_p2 }
 0x219   : > { %p1452_p7 = pnand %p1451_p4, %p1445_p1 }
 0x21b   : > { %1455 = shalt.err (!%p1452_p7)
}
 0x21c   : > { %s1456_s17 = scalar_lea.hbm %s1924_s23, %s1915_s20  ;;  %s1460_s24 = scalar_lea.hbm %s2028_s6, 1280 }
 0x21d   : > { %p1457_p8 = scmp.ne.s32.totalorder %s1924_s23, %s1456_s17  ;;  %p1461_p11 = scmp.lt.u32.totalorder %s1924_s23, %s2028_s6 }
 0x21e   : > { %p1462_p13 = scmp.lt.u32.totalorder %s1460_s24, %s1456_s17  ;;  %p1464_p1 = scmp.lt.u32.totalorder %s1456_s17, %s1924_s23 }
 0x21f   : > { %p1458_p9 = pnand %p1457_p8, %p1127_p12 }
 0x220   : > { %p1463_p0 = por %p1462_p13, %p1461_p11 }
 0x221   : > { %p1459_p10 = pneg %p1458_p9 }
 0x222   : > { %p1465_p2 = por %p1464_p1, %p1463_p0 }
 0x224   : > { %p1466_p3 = pnand %p1465_p2, %p1459_p10 }
 0x226   : > { %1469 = shalt.err (!%p1466_p3)
}
 0x227   : > { %s1571_s1 = smov 128   ;;  %s1572_s10 = smov 8  }
 0x228   : > { %833 = dma.vmem_to_hbm [thread:$0]  (%p1127_p12), %s1927_s27, %s1915_s20, %s1924_s23, %s1910_s18, %s1571_s1, %s1571_s1, %s1572_s10  }
 0x229 PF: > { %836 = sbr.rel (!%p1657_p5) target bundleno = 609 (0x261), region = 52  ;;  %s838_s11 = ssub.s32 (%p1657_p5), 10, %s1677_s21 }
 0x22a   : > { %s1148_s15 = sshll.u32 (%p1657_p5), %s1640_s0, 6  ;;  %p839_p4 = scmp.lt.s32.totalorder (%p1657_p5), %s838_s11, 8 }
 0x22b   : > { %s1961_s22 = scalar_lea.vmem (%p1657_p5), %s2029_s7, %s1148_s15  }
 0x230   : > { %s2042_s11 = smov (!%p839_p4, %s838_s11), 8 }
 0x231   : > { %s1132_s24 = sshll.u32 %s2042_s11, 7 }
 0x232   : > { %p1135_p7 = scmp.eq.s32.totalorder %s1132_s24, 0 }
 0x233   : > { %s1967_s18 = sshrl.u32 (!%p1135_p7), %s2042_s11, 3 }
 0x234   : > { %847 = sbr.rel (%p1135_p7) target bundleno = 609 (0x261), region = 56  ;;  %p1136_p5 = scmp.le.s32.totalorder (!%p1135_p7), %s1967_s18, 0 }
 0x23b   : > { %1052 = sbr.rel (%p1136_p5) target bundleno = 588 (0x24c), region = 145  ;;  %s2032_s0 = smov (!%p1136_p5), %s1961_s22 }
 0x23c   : > { %s2033_s13 = smov (!%p1136_p5), %s1863_s16  ;;  %s1976_s21 = smov (!%p1136_p5), 0  }
 0x23d   : > { %s1978_s20 = smov (!%p1136_p5), 0  }
 0x242 LB: >> { %v923_v33 = vld [vmem:[%s1544_s13] sm:$0xff]  ;;  %v925_v37 = vld [vmem:[%s1544_s13 + $0x8] sm:$0xff]  ;;  %v927_v38 = vld [vmem:[%s1544_s13 + $0x10] sm:$0xff]  ;;  %s939_s23 = sadd.s32 1, %s1548_s21  ;;  %s917_s20 = sadd.s32 1, %s1552_s20   ;;  %s1552_s20 = sphi %s1978_s20, %s917_s20   ;;  %s1548_s21 = sphi %s1976_s21, %s2034_s21   ;;  %s1544_s13 = sphi %s2033_s13, %s944_s13   ;;  %s1540_s0 = sphi %s2032_s0, %s945_s0  }
 0x243   : >> { %924 = vst [vmem:[%s1540_s0] sm:$0xff] %v923_v33  ;;  %926 = vst [vmem:[%s1540_s0 + $0x8] sm:$0xff] %v925_v37  ;;  %v929_v39 = vld [vmem:[%s1544_s13 + $0x18] sm:$0xff]  ;;  %v931_v43 = vld [vmem:[%s1544_s13 + $0x20] sm:$0xff]  ;;  %p940_p12 = scmp.ge.s32.totalorder %s939_s23, %s1967_s18  ;;  %p916_p8 = scmp.ge.s32.totalorder %s917_s20, %s1967_s18 }
 0x244   : >> { %928 = vst [vmem:[%s1540_s0 + $0x10] sm:$0xff] %v927_v38  ;;  %v933_v44 = vld [vmem:[%s1544_s13 + $0x28] sm:$0xff]  ;;  %930 = vst [vmem:[%s1540_s0 + $0x18] sm:$0xff] %v929_v39  ;;  %v935_v46 = vld [vmem:[%s1544_s13 + $0x30] sm:$0xff] }
 0x245   : >> { %932 = vst [vmem:[%s1540_s0 + $0x20] sm:$0xff] %v931_v43  ;;  %934 = vst [vmem:[%s1540_s0 + $0x28] sm:$0xff] %v933_v44  ;;  %v937_v15 = vld [vmem:[%s1544_s13 + $0x38] sm:$0xff]  ;;  %s2044_s23 = smov (%p940_p12, %s939_s23), 0  ;;  %919 = sbr.rel (!%p916_p8) target bundleno = 578 (0x242), region = 151 }
 0x246   : >> { %936 = vst [vmem:[%s1540_s0 + $0x30] sm:$0xff] %v935_v46  ;;  %938 = vst [vmem:[%s1540_s0 + $0x38] sm:$0xff] %v937_v15  ;;  %s1137_s27 = sshll.u32 %s2044_s23, 6  ;;  %s2034_s21 = smov %s2044_s23 }
 0x247   : >> { %s944_s13 = scalar_lea.vmem %s1863_s16, %s1137_s27 [#allocation6]   ;;  %s945_s0 = scalar_lea.vmem %s1961_s22, %s1137_s27  }
 0x24c PF: > { %s1997_s25 = sand.u32 7, %s2042_s11   ;;  %s1149_s26 = sshll.u32 %s1967_s18, 6 }
 0x24d   : > { %s950_s1 = scalar_lea.vmem %s1863_s16, %s1149_s26 [#allocation6]   ;;  %s952_s10 = scalar_lea.vmem %s1961_s22, %s1149_s26  }
 0x24e   : > { %p1142_p9 = scmp.le.s32.totalorder %s1997_s25, 0 }
 0x24f   : > { %s1554_s15 = smov (!%p1142_p9), %s952_s10   ;;  %s1558_s17 = smov (!%p1142_p9), %s950_s1  }
 0x250   : > { %1066 = sbr.rel (%p1142_p9) target bundleno = 609 (0x261), region = 156  ;;  %s1562_s19 = smov (!%p1142_p9), 0  }
 0x251   : > { %s1566_s24 = smov (!%p1142_p9), 0  }
 0x257 LB: >> { %v962_v16 = vld [vmem:[%s1560_s17] sm:$0xff]  ;;  %s964_s11 = sadd.s32 1, %s1564_s19  ;;  %s956_s24 = sadd.s32 1, %s1568_s24   ;;  %s1568_s24 = sphi %s1566_s24, %s956_s24   ;;  %s1564_s19 = sphi %s1562_s19, %s1563_s19   ;;  %s1560_s17 = sphi %s1558_s17, %s969_s17   ;;  %s1556_s15 = sphi %s1554_s15, %s970_s15  }
 0x258   : >> { %963 = vst [vmem:[%s1556_s15] sm:$0xff] %v962_v16  ;;  %p965_p10 = scmp.ge.s32.totalorder %s964_s11, %s1997_s25  ;;  %p955_p11 = scmp.ge.s32.totalorder %s956_s24, %s1997_s25 }
 0x25a   : >> { %s2046_s11 = smov (%p965_p10, %s964_s11), 0  ;;  %958 = sbr.rel (!%p955_p11) target bundleno = 599 (0x257), region = 162 }
 0x25b   : >> { %s1143_s16 = sshll.u32 %s2046_s11, 3  ;;  %s1563_s19 = smov %s2046_s11  }
 0x25c   : >> { %s969_s17 = scalar_lea.vmem %s950_s1, %s1143_s16 [#allocation6]   ;;  %s970_s15 = scalar_lea.vmem %s952_s10, %s1143_s16  }
 0x261 PF: > { %p1279_p13 = scmp.ge.s32.totalorder %s1536_s8, 2  ;;  %s982_s22 = sand.u32 1, %s1524_s28  }
 0x262   : > { %s983_s18 = scalar_lea.sflag [#allocation5], %s982_s22 }
 0x263   : > { %p1276_p0 = pnand %p1279_p13, %p1661_p6 }
 0x265   : > { %1519 = dma.done.wait (!%p1276_p0), %s983_s18, 1024  }
 0x266   : > { %1521 = vsyncadd (!%p1276_p0), %s983_s18, 4294966272  ;;  %p20_p1 = scmp.ge.s32.totalorder %s1644_s9, 4   ;;  %s2035_s28 = smov %s1528_s29 }
 0x267   : > { %s2036_s29 = smov %s1532_s30  ;;  %s2037_s30 = smov %s1655_s12 }
 0x268   : > { %s2038_s8 = smov %s1644_s9  ;;  %22 = sbr.rel (!%p20_p1) target bundleno = 6 (0x6), region = 173 }
 0x26f   :  { %995 = vsyncpa [#allocation5], 1 }
 0x270   :  { %997 = vsyncpa [#allocation5 + $0x1], 1 }

</bundles_post_ra>
